<compile_context>
chip_gen: v7x
topology: tpu7x:2x2x1
jax: 0.10.0
libtpu: 0.0.40
codegen_flags: <defaults>
</compile_context>

<pallas_src>
import functools

import jax
import jax.numpy as jnp
from jax import lax
from jax.experimental import pallas as pl
from jax.experimental.pallas import tpu as pltpu

_MIB = 1 << 20
_LANE_TARGET = 256        # target q*Wc per dot (MXU-native on v6e/v7x; also fine on v5e)
_BLOCK_TARGET = 2 * _MIB  # target input-block bytes per grid step


# ------------------------------ small helpers ------------------------------- #

def _vmem_capacity():
    try:
        info = pltpu.get_tpu_info()
        return int(getattr(info, "vmem_capacity_bytes", 64 << 20))
    except Exception:
        return 64 << 20   # conservative: v7x has 64 MiB VMEM per TensorCore


def _largest_divisor_leq(n, cap):
    cap = max(1, min(n, cap))
    for d in range(cap, 0, -1):
        if n % d == 0:
            return d
    return 1


def _pick_lane_chunk(W, q):
    """Largest divisor Wc of W with q*Wc <= _LANE_TARGET (block-diagonal perm chunks)."""
    best = 1
    for wc in range(1, W + 1):
        if W % wc == 0 and q * wc <= max(_LANE_TARGET, q):
            best = wc
    return best


def _pick_height_tile(H, per_row_bytes, itemsize, cap_bytes=8 * _MIB):
    """Largest sublane-aligned divisor Ht of H keeping a G=1 block under cap_bytes."""
    if H * per_row_bytes <= cap_bytes:
        return H
    mult = 8 if itemsize >= 4 else 16
    best = None
    t = mult
    while t < H:
        if H % t == 0 and t * per_row_bytes <= cap_bytes:
            best = t
        t += mult
    return best if best is not None else H


def _dot_config(dtype):
    # bf16: permutation x bf16 is exact with a bf16 MXU result (no f32 round trip).
    # anything else: run in f32 at HIGHEST precision (exact for finite f32 values).
    if dtype == jnp.bfloat16:
        return jnp.bfloat16, lax.Precision.DEFAULT, jnp.bfloat16
    return jnp.float32, lax.Precision.HIGHEST, jnp.float32


def _interleave_perm(q, Wc, dtype):
    """(q*Wc, q*Wc) 0/1 matrix P with P[j*Wc + w, w*q + j] = 1.
    Right-multiplying a lane-concat of q width-Wc planes interleaves them along lanes."""
    K = q * Wc
    src = lax.broadcasted_iota(jnp.int32, (K, K), 0)
    dst = lax.broadcasted_iota(jnp.int32, (K, K), 1)
    j = src // Wc
    w = src - j * Wc
    return (dst == w * q + j).astype(dtype)


def _compiler_params(n_grid_axes, vmem_need_bytes):
    cap = _vmem_capacity()
    limit = int(min(max(32 * _MIB, 2 * vmem_need_bytes), int(0.9 * cap)))
    return pltpu.CompilerParams(
        dimension_semantics=("parallel",) * n_grid_axes,
        vmem_limit_bytes=limit,
    )


# --------------------------------- kernels ---------------------------------- #

def _shuffle2d_kernel(x_ref, perm_ref, o_ref, *, p1, p2, G, Wc, cdt, prec, acc_dt):
    # x_ref: (G*p1*p2, Ht, W) ; perm_ref: (p2*Wc, p2*Wc) ; o_ref: (G, Ht, p1*p2*W)
    Ht, W = x_ref.shape[-2], x_ref.shape[-1]
    n = p1 * p2
    Kc = p2 * Wc

    if p2 == 1:  # no lane interleave: contiguous block copies
        for g in range(G):
            for i1 in range(p1):
                o_ref[g, :, i1 * W:(i1 + 1) * W] = x_ref[g * n + i1, :, :]
        return

    perm = perm_ref[...]                                   # VMEM-resident constant
    for c in range(W // Wc):
        lo, hi = c * Wc, (c + 1) * Wc
        parts = []
        for g in range(G):
            for i1 in range(p1):
                parts.append(jnp.concatenate(
                    [x_ref[g * n + i1 * p2 + i2, :, lo:hi] for i2 in range(p2)],
                    axis=-1))                               # (Ht, p2*Wc)
        a = jnp.concatenate(parts, axis=0).astype(cdt)      # (G*p1*Ht, Kc): large-M dot
        slab = lax.dot(a, perm, precision=prec,
                       preferred_element_type=acc_dt).astype(o_ref.dtype)
        for g in range(G):
            for i1 in range(p1):
                r0 = (g * p1 + i1) * Ht
                col = i1 * p2 * W + c * Kc
                o_ref[g, :, col:col + Kc] = slab[r0:r0 + Ht, :]


def _shuffle3d_kernel(x_ref, perm_ref, o_ref, *, p1, p2, p3, G, Wc, cdt, prec, acc_dt):
    # x_ref: (G*p1*p2*p3, 1, Ht, W) ; perm_ref: (p3*Wc, p3*Wc)
    # o_ref: (G, 1, p1, Ht, p2*p3*W)
    Ht, W = x_ref.shape[-2], x_ref.shape[-1]
    pp = p1 * p2 * p3
    Kc = p3 * Wc

    if p3 == 1:  # no lane interleave: contiguous block copies
        for g in range(G):
            for i1 in range(p1):
                for i2 in range(p2):
                    ch = g * pp + i1 * p2 + i2
                    o_ref[g, 0, i1, :, i2 * W:(i2 + 1) * W] = x_ref[ch, 0, :, :]
        return

    perm = perm_ref[...]
    for c in range(W // Wc):
        lo, hi = c * Wc, (c + 1) * Wc
        parts = []
        for g in range(G):
            for i1 in range(p1):
                for i2 in range(p2):
                    ch = g * pp + (i1 * p2 + i2) * p3
                    parts.append(jnp.concatenate(
                        [x_ref[ch + i3, 0, :, lo:hi] for i3 in range(p3)],
                        axis=-1))                           # (Ht, p3*Wc)
        a = jnp.concatenate(parts, axis=0).astype(cdt)      # (G*p1*p2*Ht, Kc)
        slab = lax.dot(a, perm, precision=prec,
                       preferred_element_type=acc_dt).astype(o_ref.dtype)
        for g in range(G):
            for i1 in range(p1):
                for i2 in range(p2):
                    r0 = ((g * p1 + i1) * p2 + i2) * Ht
                    col = i2 * p3 * W + c * Kc
                    o_ref[g, 0, i1, :, col:col + Kc] = slab[r0:r0 + Ht, :]


def _shuffle1d_kernel(x_ref, o_ref, *, p1, G):
    # x_ref: (G*p1, Ft, H, W) ; o_ref: (G, Ft, p1, H, W) — pure data movement; the
    # (f*p1 + i1) interleave is the folded output view + free wrapper reshape.
    for g in range(G):
        for i1 in range(p1):
            o_ref[g, :, i1, :, :] = x_ref[g * p1 + i1, :, :, :]


# --------------------------------- wrappers ---------------------------------- #

def pixel_shuffle_2d(x, p1, p2):
    B, Cin, H, W = x.shape
    n = p1 * p2
    assert Cin % n == 0
    C = Cin // n
    itemsize = jnp.dtype(x.dtype).itemsize
    cdt, prec, acc_dt = _dot_config(x.dtype)
    cdt_item = jnp.dtype(cdt).itemsize

    Wc = _pick_lane_chunk(W, p2)
    Kc = p2 * Wc
    Lf = n * W

    per_row_in = n * W * itemsize
    Ht = _pick_height_tile(H, 2 * per_row_in, itemsize)
    per_bc = n * Ht * W * itemsize
    g_cap = max(1, min(_BLOCK_TARGET // max(per_bc, 1), 32 // max(p1, 1)))
    G = _largest_divisor_leq(B * C, g_cap)

    in_block = G * n * Ht * W * itemsize
    out_block = G * Ht * Lf * itemsize
    temps = 2 * G * p1 * Ht * Kc * 4
    need = 2 * (in_block + out_block) + 2 * Kc * Kc * cdt_item + temps + 4 * _MIB

    xf = x.reshape(B * Cin, H, W)                 # free, contiguous
    perm = _interleave_perm(p2, Wc, cdt)          # built once in the wrapper
    kernel = functools.partial(_shuffle2d_kernel, p1=p1, p2=p2, G=G, Wc=Wc,
                               cdt=cdt, prec=prec, acc_dt=acc_dt)
    y = pl.pallas_call(
        kernel,
        out_shape=jax.ShapeDtypeStruct((B * C, H, Lf), x.dtype),
        grid=(B * C // G, H // Ht),
        in_specs=[
            pl.BlockSpec((G * n, Ht, W), lambda b, h: (b, h, 0)),
            pl.BlockSpec((Kc, Kc), lambda b, h: (0, 0)),      # constant, VMEM-resident
        ],
        out_specs=pl.BlockSpec((G, Ht, Lf), lambda b, h: (b, h, 0)),
        compiler_params=_compiler_params(2, need),
    )(xf, perm)
    # Free, contiguous relabeling: (B*C, H, p1*W*p2) -> (B, C, H*p1, W*p2)
    return y.reshape(B, C, H * p1, W * p2)


def pixel_shuffle_3d(x, p1, p2, p3):
    B, Cin, D, H, W = x.shape
    pp = p1 * p2 * p3
    assert Cin % pp == 0
    C = Cin // pp
    itemsize = jnp.dtype(x.dtype).itemsize
    cdt, prec, acc_dt = _dot_config(x.dtype)
    cdt_item = jnp.dtype(cdt).itemsize

    Wc = _pick_lane_chunk(W, p3)
    Kc = p3 * Wc
    L = p2 * p3 * W

    per_row_in = pp * W * itemsize
    Ht = _pick_height_tile(H, 2 * per_row_in, itemsize)
    per_bcd = pp * Ht * W * itemsize
    g_cap = max(1, min(_BLOCK_TARGET // max(per_bcd, 1), 32 // max(p1 * p2, 1)))
    G = _largest_divisor_leq(B * C, g_cap)

    in_block = G * pp * Ht * W * itemsize
    out_block = G * p1 * Ht * L * itemsize
    temps = 2 * G * p1 * p2 * Ht * Kc * 4
    need = 2 * (in_block + out_block) + 2 * Kc * Kc * cdt_item + temps + 4 * _MIB

    xf = x.reshape(B * Cin, D, H, W)              # free, contiguous
    perm = _interleave_perm(p3, Wc, cdt)
    kernel = functools.partial(_shuffle3d_kernel, p1=p1, p2=p2, p3=p3, G=G, Wc=Wc,
                               cdt=cdt, prec=prec, acc_dt=acc_dt)
    y = pl.pallas_call(
        kernel,
        out_shape=jax.ShapeDtypeStruct((B * C, D, p1, H, L), x.dtype),
        grid=(B * C // G, D, H // Ht),
        in_specs=[
            pl.BlockSpec((G * pp, 1, Ht, W), lambda b, d, h: (b, d, h, 0)),
            pl.BlockSpec((Kc, Kc), lambda b, d, h: (0, 0)),
        ],
        out_specs=pl.BlockSpec((G, 1, p1, Ht, L), lambda b, d, h: (b, d, 0, h, 0)),
        compiler_params=_compiler_params(3, need),
    )(xf, perm)
    # Free relabeling: (B*C, D, p1, H, p2*W*p3) -> (B, C, D*p1, H*p2, W*p3)
    return y.reshape(B, C, D * p1, H * p2, W * p3)


def pixel_shuffle_1d(x, p1):
    B, Cin, F, H, W = x.shape
    assert Cin % p1 == 0
    C = Cin // p1
    itemsize = jnp.dtype(x.dtype).itemsize

    per_f = p1 * H * W * itemsize
    Ft = _largest_divisor_leq(F, max(1, _BLOCK_TARGET // max(per_f, 1)))
    per_bc = per_f * Ft
    g_cap = max(1, min(_BLOCK_TARGET // max(per_bc, 1), 32))
    G = _largest_divisor_leq(B * C, g_cap)

    in_block = G * per_bc
    need = 4 * in_block + 4 * _MIB                # double-buffered in + out (same size)
    # TODO(synk): for extreme H*W an additional H tile could be added like dims=2/3.

    xf = x.reshape(B * Cin, F, H, W)              # free, contiguous
    kernel = functools.partial(_shuffle1d_kernel, p1=p1, G=G)
    y = pl.pallas_call(
        kernel,
        out_shape=jax.ShapeDtypeStruct((B * C, F, p1, H, W), x.dtype),
        grid=(B * C // G, F // Ft),
        in_specs=[pl.BlockSpec((G * p1, Ft, H, W), lambda b, f: (b, f, 0, 0))],
        out_specs=pl.BlockSpec((G, Ft, p1, H, W), lambda b, f: (b, f, 0, 0, 0)),
        compiler_params=_compiler_params(2, need),
    )(xf)
    return y.reshape(B, C, F * p1, H, W)


class PixelShuffleND:
    """JAX/Pallas equivalent of the PyTorch PixelShuffleND module (no parameters)."""

    def __init__(self, dims, upscale_factors=(2, 2, 2)):
        assert dims in (1, 2, 3), "dims must be 1, 2, or 3"
        self.dims = dims
        self.upscale_factors = upscale_factors

    def __call__(self, x):
        p = self.upscale_factors
        if self.dims == 3:
            return pixel_shuffle_3d(x, p[0], p[1], p[2])
        elif self.dims == 2:
            return pixel_shuffle_2d(x, p[0], p[1])
        else:
            return pixel_shuffle_1d(x, p[0])


# --------------------------- pure-JAX references ---------------------------- #

def ref_2d(x, p1, p2):
    B, Cin, H, W = x.shape
    C = Cin // (p1 * p2)
    y = x.reshape(B, C, p1, p2, H, W)
    y = jnp.transpose(y, (0, 1, 4, 2, 5, 3))
    return y.reshape(B, C, H * p1, W * p2)


def ref_3d(x, p1, p2, p3):
    B, Cin, D, H, W = x.shape
    C = Cin // (p1 * p2 * p3)
    y = x.reshape(B, C, p1, p2, p3, D, H, W)
    y = jnp.transpose(y, (0, 1, 5, 2, 6, 3, 7, 4))
    return y.reshape(B, C, D * p1, H * p2, W * p3)


def ref_1d(x, p1):
    B, Cin, F, H, W = x.shape
    C = Cin // p1
    y = x.reshape(B, C, p1, F, H, W)
    y = jnp.transpose(y, (0, 1, 3, 2, 4, 5))
    return y.reshape(B, C, F * p1, H, W)


# ---------------------------------- main ------------------------------------ #

if __name__ == "__main__":
    key = jax.random.PRNGKey(0)
    k1, k2, k3, k4 = jax.random.split(key, 4)

    # dims=2: (B, C*p1*p2, H, W) = (2, 16, 8, 8) -> (2, 4, 16, 16)
    x2 = jax.random.normal(k1, (2, 16, 8, 8), dtype=jnp.float32)
    y2 = jax.block_until_ready(PixelShuffleND(2)(x2))
    assert y2.shape == (2, 4, 16, 16)
    assert bool(jnp.allclose(y2, ref_2d(x2, 2, 2), atol=1e-6, rtol=1e-6))

    # dims=2, wide W: exercises the block-diagonal (lane-chunked) permutation path.
    xw = jax.random.normal(k4, (1, 8, 8, 256), dtype=jnp.float32)
    yw = jax.block_until_ready(PixelShuffleND(2)(xw))
    assert yw.shape == (1, 2, 16, 512)
    assert bool(jnp.allclose(yw, ref_2d(xw, 2, 2), atol=1e-6, rtol=1e-6))

    # dims=2, bf16 path (bf16 MXU result, no f32 round trip).
    x2b = x2.astype(jnp.bfloat16)
    y2b = jax.block_until_ready(PixelShuffleND(2)(x2b))
    assert y2b.dtype == jnp.bfloat16 and y2b.shape == (2, 4, 16, 16)
    assert bool(jnp.allclose(y2b.astype(jnp.float32),
                             ref_2d(x2b, 2, 2).astype(jnp.float32),
                             atol=1e-2, rtol=1e-2))

    # dims=3: (B, C*p1*p2*p3, D, H, W) = (2, 16, 4, 8, 8) -> (2, 2, 8, 16, 16)
    x3 = jax.random.normal(k2, (2, 16, 4, 8, 8), dtype=jnp.float32)
    y3 = jax.block_until_ready(PixelShuffleND(3)(x3))
    assert y3.shape == (2, 2, 8, 16, 16)
    assert bool(jnp.allclose(y3, ref_3d(x3, 2, 2, 2), atol=1e-6, rtol=1e-6))

    # dims=1: (B, C*p1, F, H, W) = (2, 8, 4, 8, 8) -> (2, 4, 8, 8, 8)
    x1 = jax.random.normal(k3, (2, 8, 4, 8, 8), dtype=jnp.float32)
    y1 = jax.block_until_ready(PixelShuffleND(1)(x1))
    assert y1.shape == (2, 4, 8, 8, 8)
    assert bool(jnp.allclose(y1, ref_1d(x1, 2), atol=1e-6, rtol=1e-6))

    print("KERNEL_OK")
</pallas_src>

<mosaic_0001>
module attributes {stable_mosaic.version = 11 : i64} {
  func.func @_shuffle2d_kernel(%arg0: i32, %arg1: i32, %arg2: memref<32x8x8xf32, #tpu.memory_space<vmem>>, %arg3: memref<16x16xf32, #tpu.memory_space<vmem>>, %arg4: memref<8x8x32xf32, #tpu.memory_space<vmem>>) attributes {dimension_semantics = [#tpu.dimension_semantics<parallel>, #tpu.dimension_semantics<parallel>], iteration_bounds = array<i64: 1, 1>, scalar_prefetch = 0 : i64, scratch_operands = 0 : i64, tpu.core_type = #tpu.core_type<tc>, window_params = [{transform_indices = @transform_0, window_bounds = array<i64: 32, 8, 8>}, {pipeline_mode = #tpu.pipeline_mode<synchronous>, transform_indices = @transform_1, window_bounds = array<i64: 16, 16>}, {transform_indices = @transform_2, window_bounds = array<i64: 8, 8, 32>}]} {
    %c0 = arith.constant 0 : index
    %c0_0 = arith.constant 0 : index
    %0 = vector.load %arg3[%c0, %c0_0] : memref<16x16xf32, #tpu.memory_space<vmem>>, vector<16x16xf32>
    %c0_1 = arith.constant 0 : index
    %c0_2 = arith.constant 0 : index
    %c0_3 = arith.constant 0 : index
    %1 = vector.load %arg2[%c0_1, %c0_2, %c0_3] : memref<32x8x8xf32, #tpu.memory_space<vmem>>, vector<1x8x8xf32>
    %2 = vector.shape_cast %1 : vector<1x8x8xf32> to vector<8x8xf32>
    %c1 = arith.constant 1 : index
    %c0_4 = arith.constant 0 : index
    %c0_5 = arith.constant 0 : index
    %3 = vector.load %arg2[%c1, %c0_4, %c0_5] : memref<32x8x8xf32, #tpu.memory_space<vmem>>, vector<1x8x8xf32>
    %4 = vector.shape_cast %3 : vector<1x8x8xf32> to vector<8x8xf32>
    %5 = tpu.concatenate %2, %4 in 1 : vector<8x8xf32>, vector<8x8xf32> -> vector<8x16xf32>
    %c2 = arith.constant 2 : index
    %c0_6 = arith.constant 0 : index
    %c0_7 = arith.constant 0 : index
    %6 = vector.load %arg2[%c2, %c0_6, %c0_7] : memref<32x8x8xf32, #tpu.memory_space<vmem>>, vector<1x8x8xf32>
    %7 = vector.shape_cast %6 : vector<1x8x8xf32> to vector<8x8xf32>
    %c3 = arith.constant 3 : index
    %c0_8 = arith.constant 0 : index
    %c0_9 = arith.constant 0 : index
    %8 = vector.load %arg2[%c3, %c0_8, %c0_9] : memref<32x8x8xf32, #tpu.memory_space<vmem>>, vector<1x8x8xf32>
    %9 = vector.shape_cast %8 : vector<1x8x8xf32> to vector<8x8xf32>
    %10 = tpu.concatenate %7, %9 in 1 : vector<8x8xf32>, vector<8x8xf32> -> vector<8x16xf32>
    %c4 = arith.constant 4 : index
    %c0_10 = arith.constant 0 : index
    %c0_11 = arith.constant 0 : index
    %11 = vector.load %arg2[%c4, %c0_10, %c0_11] : memref<32x8x8xf32, #tpu.memory_space<vmem>>, vector<1x8x8xf32>
    %12 = vector.shape_cast %11 : vector<1x8x8xf32> to vector<8x8xf32>
    %c5 = arith.constant 5 : index
    %c0_12 = arith.constant 0 : index
    %c0_13 = arith.constant 0 : index
    %13 = vector.load %arg2[%c5, %c0_12, %c0_13] : memref<32x8x8xf32, #tpu.memory_space<vmem>>, vector<1x8x8xf32>
    %14 = vector.shape_cast %13 : vector<1x8x8xf32> to vector<8x8xf32>
    %15 = tpu.concatenate %12, %14 in 1 : vector<8x8xf32>, vector<8x8xf32> -> vector<8x16xf32>
    %c6 = arith.constant 6 : index
    %c0_14 = arith.constant 0 : index
    %c0_15 = arith.constant 0 : index
    %16 = vector.load %arg2[%c6, %c0_14, %c0_15] : memref<32x8x8xf32, #tpu.memory_space<vmem>>, vector<1x8x8xf32>
    %17 = vector.shape_cast %16 : vector<1x8x8xf32> to vector<8x8xf32>
    %c7 = arith.constant 7 : index
    %c0_16 = arith.constant 0 : index
    %c0_17 = arith.constant 0 : index
    %18 = vector.load %arg2[%c7, %c0_16, %c0_17] : memref<32x8x8xf32, #tpu.memory_space<vmem>>, vector<1x8x8xf32>
    %19 = vector.shape_cast %18 : vector<1x8x8xf32> to vector<8x8xf32>
    %20 = tpu.concatenate %17, %19 in 1 : vector<8x8xf32>, vector<8x8xf32> -> vector<8x16xf32>
    %c8 = arith.constant 8 : index
    %c0_18 = arith.constant 0 : index
    %c0_19 = arith.constant 0 : index
    %21 = vector.load %arg2[%c8, %c0_18, %c0_19] : memref<32x8x8xf32, #tpu.memory_space<vmem>>, vector<1x8x8xf32>
    %22 = vector.shape_cast %21 : vector<1x8x8xf32> to vector<8x8xf32>
    %c9 = arith.constant 9 : index
    %c0_20 = arith.constant 0 : index
    %c0_21 = arith.constant 0 : index
    %23 = vector.load %arg2[%c9, %c0_20, %c0_21] : memref<32x8x8xf32, #tpu.memory_space<vmem>>, vector<1x8x8xf32>
    %24 = vector.shape_cast %23 : vector<1x8x8xf32> to vector<8x8xf32>
    %25 = tpu.concatenate %22, %24 in 1 : vector<8x8xf32>, vector<8x8xf32> -> vector<8x16xf32>
    %c10 = arith.constant 10 : index
    %c0_22 = arith.constant 0 : index
    %c0_23 = arith.constant 0 : index
    %26 = vector.load %arg2[%c10, %c0_22, %c0_23] : memref<32x8x8xf32, #tpu.memory_space<vmem>>, vector<1x8x8xf32>
    %27 = vector.shape_cast %26 : vector<1x8x8xf32> to vector<8x8xf32>
    %c11 = arith.constant 11 : index
    %c0_24 = arith.constant 0 : index
    %c0_25 = arith.constant 0 : index
    %28 = vector.load %arg2[%c11, %c0_24, %c0_25] : memref<32x8x8xf32, #tpu.memory_space<vmem>>, vector<1x8x8xf32>
    %29 = vector.shape_cast %28 : vector<1x8x8xf32> to vector<8x8xf32>
    %30 = tpu.concatenate %27, %29 in 1 : vector<8x8xf32>, vector<8x8xf32> -> vector<8x16xf32>
    %c12 = arith.constant 12 : index
    %c0_26 = arith.constant 0 : index
    %c0_27 = arith.constant 0 : index
    %31 = vector.load %arg2[%c12, %c0_26, %c0_27] : memref<32x8x8xf32, #tpu.memory_space<vmem>>, vector<1x8x8xf32>
    %32 = vector.shape_cast %31 : vector<1x8x8xf32> to vector<8x8xf32>
    %c13 = arith.constant 13 : index
    %c0_28 = arith.constant 0 : index
    %c0_29 = arith.constant 0 : index
    %33 = vector.load %arg2[%c13, %c0_28, %c0_29] : memref<32x8x8xf32, #tpu.memory_space<vmem>>, vector<1x8x8xf32>
    %34 = vector.shape_cast %33 : vector<1x8x8xf32> to vector<8x8xf32>
    %35 = tpu.concatenate %32, %34 in 1 : vector<8x8xf32>, vector<8x8xf32> -> vector<8x16xf32>
    %c14 = arith.constant 14 : index
    %c0_30 = arith.constant 0 : index
    %c0_31 = arith.constant 0 : index
    %36 = vector.load %arg2[%c14, %c0_30, %c0_31] : memref<32x8x8xf32, #tpu.memory_space<vmem>>, vector<1x8x8xf32>
    %37 = vector.shape_cast %36 : vector<1x8x8xf32> to vector<8x8xf32>
    %c15 = arith.constant 15 : index
    %c0_32 = arith.constant 0 : index
    %c0_33 = arith.constant 0 : index
    %38 = vector.load %arg2[%c15, %c0_32, %c0_33] : memref<32x8x8xf32, #tpu.memory_space<vmem>>, vector<1x8x8xf32>
    %39 = vector.shape_cast %38 : vector<1x8x8xf32> to vector<8x8xf32>
    %40 = tpu.concatenate %37, %39 in 1 : vector<8x8xf32>, vector<8x8xf32> -> vector<8x16xf32>
    %c16 = arith.constant 16 : index
    %c0_34 = arith.constant 0 : index
    %c0_35 = arith.constant 0 : index
    %41 = vector.load %arg2[%c16, %c0_34, %c0_35] : memref<32x8x8xf32, #tpu.memory_space<vmem>>, vector<1x8x8xf32>
    %42 = vector.shape_cast %41 : vector<1x8x8xf32> to vector<8x8xf32>
    %c17 = arith.constant 17 : index
    %c0_36 = arith.constant 0 : index
    %c0_37 = arith.constant 0 : index
    %43 = vector.load %arg2[%c17, %c0_36, %c0_37] : memref<32x8x8xf32, #tpu.memory_space<vmem>>, vector<1x8x8xf32>
    %44 = vector.shape_cast %43 : vector<1x8x8xf32> to vector<8x8xf32>
    %45 = tpu.concatenate %42, %44 in 1 : vector<8x8xf32>, vector<8x8xf32> -> vector<8x16xf32>
    %c18 = arith.constant 18 : index
    %c0_38 = arith.constant 0 : index
    %c0_39 = arith.constant 0 : index
    %46 = vector.load %arg2[%c18, %c0_38, %c0_39] : memref<32x8x8xf32, #tpu.memory_space<vmem>>, vector<1x8x8xf32>
    %47 = vector.shape_cast %46 : vector<1x8x8xf32> to vector<8x8xf32>
    %c19 = arith.constant 19 : index
    %c0_40 = arith.constant 0 : index
    %c0_41 = arith.constant 0 : index
    %48 = vector.load %arg2[%c19, %c0_40, %c0_41] : memref<32x8x8xf32, #tpu.memory_space<vmem>>, vector<1x8x8xf32>
    %49 = vector.shape_cast %48 : vector<1x8x8xf32> to vector<8x8xf32>
    %50 = tpu.concatenate %47, %49 in 1 : vector<8x8xf32>, vector<8x8xf32> -> vector<8x16xf32>
    %c20 = arith.constant 20 : index
    %c0_42 = arith.constant 0 : index
    %c0_43 = arith.constant 0 : index
    %51 = vector.load %arg2[%c20, %c0_42, %c0_43] : memref<32x8x8xf32, #tpu.memory_space<vmem>>, vector<1x8x8xf32>
    %52 = vector.shape_cast %51 : vector<1x8x8xf32> to vector<8x8xf32>
    %c21 = arith.constant 21 : index
    %c0_44 = arith.constant 0 : index
    %c0_45 = arith.constant 0 : index
    %53 = vector.load %arg2[%c21, %c0_44, %c0_45] : memref<32x8x8xf32, #tpu.memory_space<vmem>>, vector<1x8x8xf32>
    %54 = vector.shape_cast %53 : vector<1x8x8xf32> to vector<8x8xf32>
    %55 = tpu.concatenate %52, %54 in 1 : vector<8x8xf32>, vector<8x8xf32> -> vector<8x16xf32>
    %c22 = arith.constant 22 : index
    %c0_46 = arith.constant 0 : index
    %c0_47 = arith.constant 0 : index
    %56 = vector.load %arg2[%c22, %c0_46, %c0_47] : memref<32x8x8xf32, #tpu.memory_space<vmem>>, vector<1x8x8xf32>
    %57 = vector.shape_cast %56 : vector<1x8x8xf32> to vector<8x8xf32>
    %c23 = arith.constant 23 : index
    %c0_48 = arith.constant 0 : index
    %c0_49 = arith.constant 0 : index
    %58 = vector.load %arg2[%c23, %c0_48, %c0_49] : memref<32x8x8xf32, #tpu.memory_space<vmem>>, vector<1x8x8xf32>
    %59 = vector.shape_cast %58 : vector<1x8x8xf32> to vector<8x8xf32>
    %60 = tpu.concatenate %57, %59 in 1 : vector<8x8xf32>, vector<8x8xf32> -> vector<8x16xf32>
    %c24 = arith.constant 24 : index
    %c0_50 = arith.constant 0 : index
    %c0_51 = arith.constant 0 : index
    %61 = vector.load %arg2[%c24, %c0_50, %c0_51] : memref<32x8x8xf32, #tpu.memory_space<vmem>>, vector<1x8x8xf32>
    %62 = vector.shape_cast %61 : vector<1x8x8xf32> to vector<8x8xf32>
    %c25 = arith.constant 25 : index
    %c0_52 = arith.constant 0 : index
    %c0_53 = arith.constant 0 : index
    %63 = vector.load %arg2[%c25, %c0_52, %c0_53] : memref<32x8x8xf32, #tpu.memory_space<vmem>>, vector<1x8x8xf32>
    %64 = vector.shape_cast %63 : vector<1x8x8xf32> to vector<8x8xf32>
    %65 = tpu.concatenate %62, %64 in 1 : vector<8x8xf32>, vector<8x8xf32> -> vector<8x16xf32>
    %c26 = arith.constant 26 : index
    %c0_54 = arith.constant 0 : index
    %c0_55 = arith.constant 0 : index
    %66 = vector.load %arg2[%c26, %c0_54, %c0_55] : memref<32x8x8xf32, #tpu.memory_space<vmem>>, vector<1x8x8xf32>
    %67 = vector.shape_cast %66 : vector<1x8x8xf32> to vector<8x8xf32>
    %c27 = arith.constant 27 : index
    %c0_56 = arith.constant 0 : index
    %c0_57 = arith.constant 0 : index
    %68 = vector.load %arg2[%c27, %c0_56, %c0_57] : memref<32x8x8xf32, #tpu.memory_space<vmem>>, vector<1x8x8xf32>
    %69 = vector.shape_cast %68 : vector<1x8x8xf32> to vector<8x8xf32>
    %70 = tpu.concatenate %67, %69 in 1 : vector<8x8xf32>, vector<8x8xf32> -> vector<8x16xf32>
    %c28 = arith.constant 28 : index
    %c0_58 = arith.constant 0 : index
    %c0_59 = arith.constant 0 : index
    %71 = vector.load %arg2[%c28, %c0_58, %c0_59] : memref<32x8x8xf32, #tpu.memory_space<vmem>>, vector<1x8x8xf32>
    %72 = vector.shape_cast %71 : vector<1x8x8xf32> to vector<8x8xf32>
    %c29 = arith.constant 29 : index
    %c0_60 = arith.constant 0 : index
    %c0_61 = arith.constant 0 : index
    %73 = vector.load %arg2[%c29, %c0_60, %c0_61] : memref<32x8x8xf32, #tpu.memory_space<vmem>>, vector<1x8x8xf32>
    %74 = vector.shape_cast %73 : vector<1x8x8xf32> to vector<8x8xf32>
    %75 = tpu.concatenate %72, %74 in 1 : vector<8x8xf32>, vector<8x8xf32> -> vector<8x16xf32>
    %c30 = arith.constant 30 : index
    %c0_62 = arith.constant 0 : index
    %c0_63 = arith.constant 0 : index
    %76 = vector.load %arg2[%c30, %c0_62, %c0_63] : memref<32x8x8xf32, #tpu.memory_space<vmem>>, vector<1x8x8xf32>
    %77 = vector.shape_cast %76 : vector<1x8x8xf32> to vector<8x8xf32>
    %c31 = arith.constant 31 : index
    %c0_64 = arith.constant 0 : index
    %c0_65 = arith.constant 0 : index
    %78 = vector.load %arg2[%c31, %c0_64, %c0_65] : memref<32x8x8xf32, #tpu.memory_space<vmem>>, vector<1x8x8xf32>
    %79 = vector.shape_cast %78 : vector<1x8x8xf32> to vector<8x8xf32>
    %80 = tpu.concatenate %77, %79 in 1 : vector<8x8xf32>, vector<8x8xf32> -> vector<8x16xf32>
    %81 = tpu.concatenate %5, %10, %15, %20, %25, %30, %35, %40, %45, %50, %55, %60, %65, %70, %75, %80 in 0 : vector<8x16xf32>, vector<8x16xf32>, vector<8x16xf32>, vector<8x16xf32>, vector<8x16xf32>, vector<8x16xf32>, vector<8x16xf32>, vector<8x16xf32>, vector<8x16xf32>, vector<8x16xf32>, vector<8x16xf32>, vector<8x16xf32>, vector<8x16xf32>, vector<8x16xf32>, vector<8x16xf32>, vector<8x16xf32> -> vector<128x16xf32>
    %cst = arith.constant dense<0.000000e+00> : vector<128x16xf32>
    %82 = tpu.matmul %81, %0, %cst {dimension_numbers = #tpu.dot_dimension_numbers<[1], [0], [0], [1], [0, 0, 1, 1], [], []>, precision = #tpu.contract_precision<fp32>} : vector<128x16xf32>, vector<16x16xf32>, vector<128x16xf32> -> vector<128x16xf32>
    %83 = vector.extract_strided_slice %82 {offsets = [0, 0], sizes = [8, 16], strides = [1, 1]} : vector<128x16xf32> to vector<8x16xf32>
    %c0_66 = arith.constant 0 : index
    %c0_67 = arith.constant 0 : index
    %c0_68 = arith.constant 0 : index
    %84 = vector.load %arg4[%c0_66, %c0_67, %c0_68] : memref<8x8x32xf32, #tpu.memory_space<vmem>>, vector<1x8x16xf32>
    %85 = vector.shape_cast %84 : vector<1x8x16xf32> to vector<8x16xf32>
    %86 = vector.shape_cast %83 : vector<8x16xf32> to vector<1x8x16xf32>
    tpu.vector_store %arg4[%c0_66, %c0_67, %c0_68], %86 {strides = array<i32>} : memref<8x8x32xf32, #tpu.memory_space<vmem>>, vector<1x8x16xf32>,
    %87 = vector.extract_strided_slice %82 {offsets = [8, 0], sizes = [8, 16], strides = [1, 1]} : vector<128x16xf32> to vector<8x16xf32>
    %c0_69 = arith.constant 0 : index
    %c0_70 = arith.constant 0 : index
    %c16_71 = arith.constant 16 : index
    %88 = vector.load %arg4[%c0_69, %c0_70, %c16_71] : memref<8x8x32xf32, #tpu.memory_space<vmem>>, vector<1x8x16xf32>
    %89 = vector.shape_cast %88 : vector<1x8x16xf32> to vector<8x16xf32>
    %90 = vector.shape_cast %87 : vector<8x16xf32> to vector<1x8x16xf32>
    tpu.vector_store %arg4[%c0_69, %c0_70, %c16_71], %90 {strides = array<i32>} : memref<8x8x32xf32, #tpu.memory_space<vmem>>, vector<1x8x16xf32>,
    %91 = vector.extract_strided_slice %82 {offsets = [16, 0], sizes = [8, 16], strides = [1, 1]} : vector<128x16xf32> to vector<8x16xf32>
    %c1_72 = arith.constant 1 : index
    %c0_73 = arith.constant 0 : index
    %c0_74 = arith.constant 0 : index
    %92 = vector.load %arg4[%c1_72, %c0_73, %c0_74] : memref<8x8x32xf32, #tpu.memory_space<vmem>>, vector<1x8x16xf32>
    %93 = vector.shape_cast %92 : vector<1x8x16xf32> to vector<8x16xf32>
    %94 = vector.shape_cast %91 : vector<8x16xf32> to vector<1x8x16xf32>
    tpu.vector_store %arg4[%c1_72, %c0_73, %c0_74], %94 {strides = array<i32>} : memref<8x8x32xf32, #tpu.memory_space<vmem>>, vector<1x8x16xf32>,
    %95 = vector.extract_strided_slice %82 {offsets = [24, 0], sizes = [8, 16], strides = [1, 1]} : vector<128x16xf32> to vector<8x16xf32>
    %c1_75 = arith.constant 1 : index
    %c0_76 = arith.constant 0 : index
    %c16_77 = arith.constant 16 : index
    %96 = vector.load %arg4[%c1_75, %c0_76, %c16_77] : memref<8x8x32xf32, #tpu.memory_space<vmem>>, vector<1x8x16xf32>
    %97 = vector.shape_cast %96 : vector<1x8x16xf32> to vector<8x16xf32>
    %98 = vector.shape_cast %95 : vector<8x16xf32> to vector<1x8x16xf32>
    tpu.vector_store %arg4[%c1_75, %c0_76, %c16_77], %98 {strides = array<i32>} : memref<8x8x32xf32, #tpu.memory_space<vmem>>, vector<1x8x16xf32>,
    %99 = vector.extract_strided_slice %82 {offsets = [32, 0], sizes = [8, 16], strides = [1, 1]} : vector<128x16xf32> to vector<8x16xf32>
    %c2_78 = arith.constant 2 : index
    %c0_79 = arith.constant 0 : index
    %c0_80 = arith.constant 0 : index
    %100 = vector.load %arg4[%c2_78, %c0_79, %c0_80] : memref<8x8x32xf32, #tpu.memory_space<vmem>>, vector<1x8x16xf32>
    %101 = vector.shape_cast %100 : vector<1x8x16xf32> to vector<8x16xf32>
    %102 = vector.shape_cast %99 : vector<8x16xf32> to vector<1x8x16xf32>
    tpu.vector_store %arg4[%c2_78, %c0_79, %c0_80], %102 {strides = array<i32>} : memref<8x8x32xf32, #tpu.memory_space<vmem>>, vector<1x8x16xf32>,
    %103 = vector.extract_strided_slice %82 {offsets = [40, 0], sizes = [8, 16], strides = [1, 1]} : vector<128x16xf32> to vector<8x16xf32>
    %c2_81 = arith.constant 2 : index
    %c0_82 = arith.constant 0 : index
    %c16_83 = arith.constant 16 : index
    %104 = vector.load %arg4[%c2_81, %c0_82, %c16_83] : memref<8x8x32xf32, #tpu.memory_space<vmem>>, vector<1x8x16xf32>
    %105 = vector.shape_cast %104 : vector<1x8x16xf32> to vector<8x16xf32>
    %106 = vector.shape_cast %103 : vector<8x16xf32> to vector<1x8x16xf32>
    tpu.vector_store %arg4[%c2_81, %c0_82, %c16_83], %106 {strides = array<i32>} : memref<8x8x32xf32, #tpu.memory_space<vmem>>, vector<1x8x16xf32>,
    %107 = vector.extract_strided_slice %82 {offsets = [48, 0], sizes = [8, 16], strides = [1, 1]} : vector<128x16xf32> to vector<8x16xf32>
    %c3_84 = arith.constant 3 : index
    %c0_85 = arith.constant 0 : index
    %c0_86 = arith.constant 0 : index
    %108 = vector.load %arg4[%c3_84, %c0_85, %c0_86] : memref<8x8x32xf32, #tpu.memory_space<vmem>>, vector<1x8x16xf32>
    %109 = vector.shape_cast %108 : vector<1x8x16xf32> to vector<8x16xf32>
    %110 = vector.shape_cast %107 : vector<8x16xf32> to vector<1x8x16xf32>
    tpu.vector_store %arg4[%c3_84, %c0_85, %c0_86], %110 {strides = array<i32>} : memref<8x8x32xf32, #tpu.memory_space<vmem>>, vector<1x8x16xf32>,
    %111 = vector.extract_strided_slice %82 {offsets = [56, 0], sizes = [8, 16], strides = [1, 1]} : vector<128x16xf32> to vector<8x16xf32>
    %c3_87 = arith.constant 3 : index
    %c0_88 = arith.constant 0 : index
    %c16_89 = arith.constant 16 : index
    %112 = vector.load %arg4[%c3_87, %c0_88, %c16_89] : memref<8x8x32xf32, #tpu.memory_space<vmem>>, vector<1x8x16xf32>
    %113 = vector.shape_cast %112 : vector<1x8x16xf32> to vector<8x16xf32>
    %114 = vector.shape_cast %111 : vector<8x16xf32> to vector<1x8x16xf32>
    tpu.vector_store %arg4[%c3_87, %c0_88, %c16_89], %114 {strides = array<i32>} : memref<8x8x32xf32, #tpu.memory_space<vmem>>, vector<1x8x16xf32>,
    %115 = vector.extract_strided_slice %82 {offsets = [64, 0], sizes = [8, 16], strides = [1, 1]} : vector<128x16xf32> to vector<8x16xf32>
    %c4_90 = arith.constant 4 : index
    %c0_91 = arith.constant 0 : index
    %c0_92 = arith.constant 0 : index
    %116 = vector.load %arg4[%c4_90, %c0_91, %c0_92] : memref<8x8x32xf32, #tpu.memory_space<vmem>>, vector<1x8x16xf32>
    %117 = vector.shape_cast %116 : vector<1x8x16xf32> to vector<8x16xf32>
    %118 = vector.shape_cast %115 : vector<8x16xf32> to vector<1x8x16xf32>
    tpu.vector_store %arg4[%c4_90, %c0_91, %c0_92], %118 {strides = array<i32>} : memref<8x8x32xf32, #tpu.memory_space<vmem>>, vector<1x8x16xf32>,
    %119 = vector.extract_strided_slice %82 {offsets = [72, 0], sizes = [8, 16], strides = [1, 1]} : vector<128x16xf32> to vector<8x16xf32>
    %c4_93 = arith.constant 4 : index
    %c0_94 = arith.constant 0 : index
    %c16_95 = arith.constant 16 : index
    %120 = vector.load %arg4[%c4_93, %c0_94, %c16_95] : memref<8x8x32xf32, #tpu.memory_space<vmem>>, vector<1x8x16xf32>
    %121 = vector.shape_cast %120 : vector<1x8x16xf32> to vector<8x16xf32>
    %122 = vector.shape_cast %119 : vector<8x16xf32> to vector<1x8x16xf32>
    tpu.vector_store %arg4[%c4_93, %c0_94, %c16_95], %122 {strides = array<i32>} : memref<8x8x32xf32, #tpu.memory_space<vmem>>, vector<1x8x16xf32>,
    %123 = vector.extract_strided_slice %82 {offsets = [80, 0], sizes = [8, 16], strides = [1, 1]} : vector<128x16xf32> to vector<8x16xf32>
    %c5_96 = arith.constant 5 : index
    %c0_97 = arith.constant 0 : index
    %c0_98 = arith.constant 0 : index
    %124 = vector.load %arg4[%c5_96, %c0_97, %c0_98] : memref<8x8x32xf32, #tpu.memory_space<vmem>>, vector<1x8x16xf32>
    %125 = vector.shape_cast %124 : vector<1x8x16xf32> to vector<8x16xf32>
    %126 = vector.shape_cast %123 : vector<8x16xf32> to vector<1x8x16xf32>
    tpu.vector_store %arg4[%c5_96, %c0_97, %c0_98], %126 {strides = array<i32>} : memref<8x8x32xf32, #tpu.memory_space<vmem>>, vector<1x8x16xf32>,
    %127 = vector.extract_strided_slice %82 {offsets = [88, 0], sizes = [8, 16], strides = [1, 1]} : vector<128x16xf32> to vector<8x16xf32>
    %c5_99 = arith.constant 5 : index
    %c0_100 = arith.constant 0 : index
    %c16_101 = arith.constant 16 : index
    %128 = vector.load %arg4[%c5_99, %c0_100, %c16_101] : memref<8x8x32xf32, #tpu.memory_space<vmem>>, vector<1x8x16xf32>
    %129 = vector.shape_cast %128 : vector<1x8x16xf32> to vector<8x16xf32>
    %130 = vector.shape_cast %127 : vector<8x16xf32> to vector<1x8x16xf32>
    tpu.vector_store %arg4[%c5_99, %c0_100, %c16_101], %130 {strides = array<i32>} : memref<8x8x32xf32, #tpu.memory_space<vmem>>, vector<1x8x16xf32>,
    %131 = vector.extract_strided_slice %82 {offsets = [96, 0], sizes = [8, 16], strides = [1, 1]} : vector<128x16xf32> to vector<8x16xf32>
    %c6_102 = arith.constant 6 : index
    %c0_103 = arith.constant 0 : index
    %c0_104 = arith.constant 0 : index
    %132 = vector.load %arg4[%c6_102, %c0_103, %c0_104] : memref<8x8x32xf32, #tpu.memory_space<vmem>>, vector<1x8x16xf32>
    %133 = vector.shape_cast %132 : vector<1x8x16xf32> to vector<8x16xf32>
    %134 = vector.shape_cast %131 : vector<8x16xf32> to vector<1x8x16xf32>
    tpu.vector_store %arg4[%c6_102, %c0_103, %c0_104], %134 {strides = array<i32>} : memref<8x8x32xf32, #tpu.memory_space<vmem>>, vector<1x8x16xf32>,
    %135 = vector.extract_strided_slice %82 {offsets = [104, 0], sizes = [8, 16], strides = [1, 1]} : vector<128x16xf32> to vector<8x16xf32>
    %c6_105 = arith.constant 6 : index
    %c0_106 = arith.constant 0 : index
    %c16_107 = arith.constant 16 : index
    %136 = vector.load %arg4[%c6_105, %c0_106, %c16_107] : memref<8x8x32xf32, #tpu.memory_space<vmem>>, vector<1x8x16xf32>
    %137 = vector.shape_cast %136 : vector<1x8x16xf32> to vector<8x16xf32>
    %138 = vector.shape_cast %135 : vector<8x16xf32> to vector<1x8x16xf32>
    tpu.vector_store %arg4[%c6_105, %c0_106, %c16_107], %138 {strides = array<i32>} : memref<8x8x32xf32, #tpu.memory_space<vmem>>, vector<1x8x16xf32>,
    %139 = vector.extract_strided_slice %82 {offsets = [112, 0], sizes = [8, 16], strides = [1, 1]} : vector<128x16xf32> to vector<8x16xf32>
    %c7_108 = arith.constant 7 : index
    %c0_109 = arith.constant 0 : index
    %c0_110 = arith.constant 0 : index
    %140 = vector.load %arg4[%c7_108, %c0_109, %c0_110] : memref<8x8x32xf32, #tpu.memory_space<vmem>>, vector<1x8x16xf32>
    %141 = vector.shape_cast %140 : vector<1x8x16xf32> to vector<8x16xf32>
    %142 = vector.shape_cast %139 : vector<8x16xf32> to vector<1x8x16xf32>
    tpu.vector_store %arg4[%c7_108, %c0_109, %c0_110], %142 {strides = array<i32>} : memref<8x8x32xf32, #tpu.memory_space<vmem>>, vector<1x8x16xf32>,
    %143 = vector.extract_strided_slice %82 {offsets = [120, 0], sizes = [8, 16], strides = [1, 1]} : vector<128x16xf32> to vector<8x16xf32>
    %c7_111 = arith.constant 7 : index
    %c0_112 = arith.constant 0 : index
    %c16_113 = arith.constant 16 : index
    %144 = vector.load %arg4[%c7_111, %c0_112, %c16_113] : memref<8x8x32xf32, #tpu.memory_space<vmem>>, vector<1x8x16xf32>
    %145 = vector.shape_cast %144 : vector<1x8x16xf32> to vector<8x16xf32>
    %146 = vector.shape_cast %143 : vector<8x16xf32> to vector<1x8x16xf32>
    tpu.vector_store %arg4[%c7_111, %c0_112, %c16_113], %146 {strides = array<i32>} : memref<8x8x32xf32, #tpu.memory_space<vmem>>, vector<1x8x16xf32>,
    return
  }
  func.func @transform_0(%arg0: i32, %arg1: i32) -> (i32, i32, i32) {
    %c0_i32 = arith.constant 0 : i32
    %c0_i32_0 = arith.constant 0 : i32
    return %arg0, %arg1, %c0_i32 : i32, i32, i32
  }
  func.func @transform_1(%arg0: i32, %arg1: i32) -> (i32, i32) {
    %c0_i32 = arith.constant 0 : i32
    %c0_i32_0 = arith.constant 0 : i32
    %c0_i32_1 = arith.constant 0 : i32
    return %c0_i32, %c0_i32_0 : i32, i32
  }
  func.func @transform_2(%arg0: i32, %arg1: i32) -> (i32, i32, i32) {
    %c0_i32 = arith.constant 0 : i32
    %c0_i32_0 = arith.constant 0 : i32
    return %arg0, %arg1, %c0_i32 : i32, i32, i32
  }
}

</mosaic_0001>

<bundles_post_ra>
// kernel: tpu_custom_call.1
= control target key start
LH: loop header
LB: loop body
LE: loop exit
PB: predicated region body
PF: predicated region fallthrough
CT: control target
= control target key end

     0   :  { %s1822_s13 = smov 8   ;;  %s2224_s0 = inlined_call_operand.vmem [shape: f32[32,8,8], index: 0, kind: input, shape index: {}]   ;;  %s2225_s1 = inlined_call_operand.vmem [shape: f32[16,16], index: 1, kind: input, shape index: {}]   ;;  %s2226_s2 = inlined_call_operand.hbm [shape: f32[8,8,32], index: 2, kind: output, shape index: {}]  }
   0x1   :  { %v1387_v0 = vld [vmem:[%s2224_s0 + $0x28] sm:$0xff]  ;;  %v1389_v2 = vld [vmem:[%s2224_s0 + $0x38] sm:$0xff]  ;;  %v12_v6 = vld [vmem:[%s2225_s1] sm:$0xff] }
   0x2   :  { %v1383_v1 = vld [vmem:[%s2224_s0 + $0x8] sm:$0xff]  ;;  %37 = vrot.lane.b32.xlu1 %v1387_v0, %s1822_s13  ;;  %v1385_v3 = vld [vmem:[%s2224_s0 + $0x18] sm:$0xff]  ;;  %v208_v8 = vand.u32 4294901760, %v12_v6 }
   0x3   :  { %18 = vrot.lane.b32.xlu0 %v1383_v1, %s1822_s13  ;;  %v1393_v4 = vld [vmem:[%s2224_s0 + $0x58] sm:$0xff]  ;;  %v1391_v5 = vld [vmem:[%s2224_s0 + $0x48] sm:$0xff] }
   0x4   :  { %v13_v7 = vld [vmem:[%s2225_s1 + $0x8] sm:$0xff]  ;;  %v1397_v10 = vld [vmem:[%s2224_s0 + $0x78] sm:$0xff]  ;;  %v436_v13 = vsub.f32 %v12_v6, %v208_v8 }
   0x5   :  { %v211_v9 = vand.u32 4294901760, %v13_v7  ;;  %v1395_v11 = vld [vmem:[%s2224_s0 + $0x68] sm:$0xff] }
   0x6   :  { %46 = vrot.lane.b32.xlu1 %v1389_v2, %s1822_s13 }
   0x7   :  { %28 = vrot.lane.b32.xlu0 %v1385_v3, %s1822_s13  ;;  %v1877_v12 = vpack.c.bf16 %v211_v9, %v208_v8  ;;  %v443_v14 = vsub.f32 %v13_v7, %v211_v9 }
   0xa   :  { %64 = vrot.lane.b32.xlu1 %v1393_v4, %s1822_s13 }
   0xb   :  { %55 = vrot.lane.b32.xlu0 %v1391_v5, %s1822_s13 }
   0xc   :  { %7 = vsyncpa [#allocation3], 0  ;;  %v437_v15 = vand.u32 4294901760, %v436_v13  ;;  %v444_v16 = vand.u32 4294901760, %v443_v14  ;;  %v1401_v17 = vld [vmem:[%s2224_s0 + $0x98] sm:$0xff]  ;;  %v1399_v18 = vld [vmem:[%s2224_s0 + $0x88] sm:$0xff]  ;;  %1703 = vmatprep.subr.bf16.mxu0 %v1877_v12  ;;  %1691 = vmatprep.subr.bf16.mxu1 %v1877_v12  ;;  %v1923_v31 = vpack.c.bf16 %v443_v14, %v436_v13 }
   0xd   :  { %1705 = vmatpush3.bf16.msra.mxu0 %v1877_v12  ;;  %1693 = vmatpush3.bf16.msra.mxu1 %v1877_v12  ;;  %v1405_v24 = vld [vmem:[%s2224_s0 + $0xb8] sm:$0xff]  ;;  %v1403_v25 = vld [vmem:[%s2224_s0 + $0xa8] sm:$0xff]  ;;  %vm21_vm0 = vcmask 64512   ;;  %v1386_v32 = vld [vmem:[%s2224_s0 + $0x20] sm:$0xff]  ;;  %vm158_vm1 = vcmask 130048   ;;  %vm1316_vm2 = vcmask 261248  }
   0xe   :  { %82 = vrot.lane.b32.xlu1 %v1397_v10, %s1822_s13  ;;  %v438_v19 = vsub.f32 %v436_v13, %v437_v15  ;;  %v445_v20 = vsub.f32 %v443_v14, %v444_v16  ;;  %v1891_v21 = vpack.c.bf16 %v444_v16, %v437_v15  ;;  %v1409_v27 = vld [vmem:[%s2224_s0 + $0xd8] sm:$0xff]  ;;  %v1407_v28 = vld [vmem:[%s2224_s0 + $0xc8] sm:$0xff]  ;;  %v14_v33 = vld [vmem:[%s2224_s0] sm:$0xff]  ;;  %s1824_s22 = smov [#allocation2]  }
   0xf   :  { %73 = vrot.lane.b32.xlu0 %v1395_v11, %s1822_s13  ;;  %v1413_v29 = vld [vmem:[%s2224_s0 + $0xf8] sm:$0xff]  ;;  %v1411_v30 = vld [vmem:[%s2224_s0 + $0xe8] sm:$0xff]  ;;  %v1388_v40 = vld [vmem:[%s2224_s0 + $0x30] sm:$0xff]  ;;  %s1372_s23 = sshll.u32 %s1824_s22, 4  ;;  %s1373_s23 = int_to_ptr.vmem [resolvable:$true] %s1372_s23 }
  0x10   :  { %v439_v22 = vand.u32 4294901760, %v438_v19  ;;  %v446_v23 = vand.u32 4294901760, %v445_v20  ;;  %1707 = vmatprep.subr.bf16.mxu0 %v1891_v21  ;;  %v1384_v41 = vld [vmem:[%s2224_s0 + $0x10] sm:$0xff]  ;;  %v1390_v53 = vld [vmem:[%s2224_s0 + $0x40] sm:$0xff]  ;;  %s1798_s24 = scalar_lea.vmem %s1373_s23, 1024  ;;  %p1803_p1 = scmp.lt.s32.totalorder %s1373_s23, %s1373_s23 }
  0x11   :  { %v1392_v52 = vld [vmem:[%s2224_s0 + $0x50] sm:$0xff]  ;;  %v1394_v3 = vld [vmem:[%s2224_s0 + $0x60] sm:$0xff]  ;;  %p1799_p0 = scmp.ne.s32.totalorder %s1373_s23, %s1798_s24  ;;  %p1804_p2 = scmp.lt.s32.totalorder %s1798_s24, %s1798_s24 }
  0x12   :  { %100 = vrot.lane.b32.xlu1 %v1401_v17, %s1822_s13  ;;  %v1902_v26 = vpack.c.bf16 %v446_v23, %v439_v22  ;;  %v1396_v2 = vld [vmem:[%s2224_s0 + $0x70] sm:$0xff]  ;;  %v1398_v22 = vld [vmem:[%s2224_s0 + $0x80] sm:$0xff] }
  0x13   :  { %91 = vrot.lane.b32.xlu0 %v1399_v18, %s1822_s13  ;;  %v1400_v20 = vld [vmem:[%s2224_s0 + $0x90] sm:$0xff]  ;;  %p1805_p3 = por %p1804_p2, %p1803_p1 }
  0x14   :  { %1695 = vmatprep.subr.bf16.mxu1 %v1902_v26 }
  0x15   :  { %p1806_p4 = pnand %p1805_p3, %p1799_p0 }
  0x16   :  { %118 = vrot.lane.b32.xlu1 %v1405_v24, %s1822_s13 }
  0x17   :  { %109 = vrot.lane.b32.xlu0 %v1403_v25, %s1822_s13 }
  0x1a   :  { %136 = vrot.lane.b32.xlu1 %v1409_v27, %s1822_s13 }
  0x1b   :  { %127 = vrot.lane.b32.xlu0 %v1407_v28, %s1822_s13 }
  0x1e   :  { %154 = vrot.lane.b32.xlu1 %v1413_v29, %s1822_s13 }
  0x1f   :  { %145 = vrot.lane.b32.xlu0 %v1411_v30, %s1822_s13 }
  0x74   :  { %v38_v34 = vpop.permute.xlu1 %37 }
  0x75   :  { %v19_v35 = vpop.permute.xlu0 %18  ;;  %v40_v36 = vsel %vm21_vm0, %v1386_v32, %v38_v34 }
  0x76   :  { %v22_v37 = vsel %vm21_vm0, %v14_v33, %v19_v35  ;;  %v166_v38 = vsel %vm158_vm1, %v40_v36, 0 }
  0x77   :  { %v160_v39 = vsel %vm158_vm1, %v22_v37, 0  ;;  %v1941_v42 = vand.u32 4294901760, %v166_v38 }
  0x78   :  { %v1943_v43 = vand.u32 4294901760, %v160_v39  ;;  %v47_v44 = vpop.permute.xlu1 %46 }
  0x79   :  { %v29_v45 = vpop.permute.xlu0 %28  ;;  %v1946_v46 = vsub.f32 %v166_v38, %v1941_v42  ;;  %v49_v48 = vsel %vm21_vm0, %v1388_v40, %v47_v44  ;;  %v1404_v40 = vld [vmem:[%s2224_s0 + $0xb0] sm:$0xff] }
  0x7a   :  { %v1949_v47 = vsub.f32 %v160_v39, %v1943_v43  ;;  %v31_v49 = vsel %vm21_vm0, %v1384_v41, %v29_v45  ;;  %v169_v50 = vsel %vm158_vm1, %v49_v48, 0  ;;  %v1402_v41 = vld [vmem:[%s2224_s0 + $0xa0] sm:$0xff] }
  0x7b   :  { %v163_v51 = vsel %vm158_vm1, %v31_v49, 0  ;;  %v1961_v54 = vand.u32 4294901760, %v169_v50  ;;  %v296_v59 = vand.u32 4294901760, %v1946_v46 }
  0x7c   :  { %v1963_v55 = vand.u32 4294901760, %v163_v51  ;;  %v276_v56 = vand.u32 4294901760, %v1949_v47  ;;  %v65_v57 = vpop.permute.xlu1 %64 }
  0x7d   :  { %v56_v58 = vpop.permute.xlu0 %55  ;;  %v1968_v60 = vsub.f32 %v169_v50, %v1961_v54  ;;  %v67_v62 = vsel %vm21_vm0, %v1392_v52, %v65_v57  ;;  %v297_v13 = vsub.f32 %v1946_v46, %v296_v59 }
  0x7e   :  { %v1971_v61 = vsub.f32 %v163_v51, %v1963_v55  ;;  %v58_v63 = vsel %vm21_vm0, %v1390_v53, %v56_v58  ;;  %1610 = vmatprep.mubr.f32.mxu0 %v276_v56  ;;  %v175_v0 = vsel %vm158_vm1, %v67_v62, 0  ;;  %v277_v4 = vsub.f32 %v1949_v47, %v276_v56 }
  0x7f   :  { %v172_v1 = vsel %vm158_vm1, %v58_v63, 0  ;;  %v1984_v5 = vand.u32 4294901760, %v175_v0  ;;  %v306_v11 = vand.u32 4294901760, %v1968_v60  ;;  %v298_v32 = vand.u32 4294901760, %v297_v13 }
  0x80   :  { %v1986_v6 = vand.u32 4294901760, %v172_v1  ;;  %v286_v7 = vand.u32 4294901760, %v1971_v61  ;;  %v83_v8 = vpop.permute.xlu1 %82  ;;  %v278_v10 = vand.u32 4294901760, %v277_v4 }
  0x81   :  { %v74_v9 = vpop.permute.xlu0 %73  ;;  %v1992_v14 = vsub.f32 %v175_v0, %v1984_v5  ;;  %v85_v16 = vsel %vm21_vm0, %v1396_v2, %v83_v8  ;;  %v307_v33 = vsub.f32 %v1968_v60, %v306_v11  ;;  %v1406_v2 = vld [vmem:[%s2224_s0 + $0xc0] sm:$0xff] }
  0x82   :  { %v1995_v15 = vsub.f32 %v172_v1, %v1986_v6  ;;  %v76_v17 = vsel %vm21_vm0, %v1394_v3, %v74_v9  ;;  %1611 = vmatmul.mubr.f32.vlgmr.msra.gmra.mrb[0].mxu0 %v286_v7  ;;  %v181_v18 = vsel %vm158_vm1, %v85_v16, 0  ;;  %1526 = vmatprep.mubr.f32.mxu1 %v278_v10  ;;  %v287_v23 = vsub.f32 %v1971_v61, %v286_v7  ;;  %v1408_v1 = vld [vmem:[%s2224_s0 + $0xd0] sm:$0xff] }
  0x83   :  { %v178_v19 = vsel %vm158_vm1, %v76_v17, 0  ;;  %1613 = vmatprep.mubr.f32.mxu0 %v296_v59  ;;  %v2008_v24 = vand.u32 4294901760, %v181_v18  ;;  %1709 = vmatpush3.bf16.msra.mxu0 %v1891_v21  ;;  %v326_v34 = vand.u32 4294901760, %v1992_v14  ;;  %v308_v52 = vand.u32 4294901760, %v307_v33 }
  0x84   :  { %v2010_v25 = vand.u32 4294901760, %v178_v19  ;;  %v316_v27 = vand.u32 4294901760, %v1995_v15  ;;  %v101_v28 = vpop.permute.xlu1 %100  ;;  %v288_v30 = vand.u32 4294901760, %v287_v23  ;;  %1711 = vmatprep.subr.bf16.mxu0 %v1877_v12 }
  0x85   :  { %v92_v29 = vpop.permute.xlu0 %91  ;;  %v2018_v35 = vsub.f32 %v181_v18, %v2008_v24  ;;  %v103_v21 = vsel %vm21_vm0, %v1400_v20, %v101_v28  ;;  %v327_v56 = vsub.f32 %v1992_v14, %v326_v34  ;;  %v1412_v28 = vld [vmem:[%s2224_s0 + $0xf0] sm:$0xff] }
  0x86   :  { %v2021_v36 = vsub.f32 %v178_v19, %v2010_v25  ;;  %v94_v37 = vsel %vm21_vm0, %v1398_v22, %v92_v29  ;;  %1614 = vmatmul.mubr.f32.gmra.mrb[2].mxu0 %v306_v11  ;;  %v187_v38 = vsel %vm158_vm1, %v103_v21, 0  ;;  %1527 = vmatmul.mubr.f32.vlgmr.msra.gmra.mrb[0].mxu1 %v288_v30  ;;  %v317_v44 = vsub.f32 %v1995_v15, %v316_v27  ;;  %v1410_v29 = vld [vmem:[%s2224_s0 + $0xe0] sm:$0xff]  ;;  %s1823_s0 = smov 16  }
  0x87   :  { %v184_v39 = vsel %vm158_vm1, %v94_v37, 0  ;;  %1616 = vmatprep.mubr.f32.mxu0 %v316_v27  ;;  %v2034_v45 = vand.u32 4294901760, %v187_v38  ;;  %1697 = vmatpush3.bf16.msra.mxu1 %v1902_v26  ;;  %v346_v57 = vand.u32 4294901760, %v2018_v35  ;;  %v328_v11 = vand.u32 4294901760, %v327_v56 }
  0x88   :  { %v2036_v48 = vand.u32 4294901760, %v184_v39  ;;  %1529 = vmatprep.mubr.f32.mxu1 %v298_v32  ;;  %v336_v49 = vand.u32 4294901760, %v2021_v36  ;;  %v119_v50 = vpop.permute.xlu1 %118  ;;  %v318_v53 = vand.u32 4294901760, %v317_v44  ;;  %1699 = vmatprep.subr.bf16.mxu1 %v1923_v31 }
  0x89   :  { %v110_v51 = vpop.permute.xlu0 %109  ;;  %v2044_v58 = vsub.f32 %v187_v38, %v2034_v45  ;;  %v121_v26 = vsel %vm21_vm0, %v1404_v40, %v119_v50  ;;  %v347_v16 = vsub.f32 %v2018_v35, %v346_v57 }
  0x8a   :  { %v2047_v59 = vsub.f32 %v184_v39, %v2036_v48  ;;  %v112_v62 = vsel %vm21_vm0, %v1402_v41, %v110_v51  ;;  %1617 = vmatmul.mubr.f32.gmra.mrb[4].mxu0 %v326_v34  ;;  %v193_v63 = vsel %vm158_vm1, %v121_v26, 0  ;;  %1530 = vmatmul.mubr.f32.gmra.mrb[2].mxu1 %v308_v52  ;;  %v337_v3 = vsub.f32 %v2021_v36, %v336_v49 }
  0x8b   :  { %v190_v0 = vsel %vm158_vm1, %v112_v62, 0  ;;  %1619 = vmatprep.mubr.f32.mxu0 %v336_v49  ;;  %v2060_v4 = vand.u32 4294901760, %v193_v63  ;;  %1532 = vmatprep.mubr.f32.mxu1 %v318_v53  ;;  %v366_v17 = vand.u32 4294901760, %v2044_v58  ;;  %v348_v38 = vand.u32 4294901760, %v347_v16 }
  0x8c   :  { %v2062_v7 = vand.u32 4294901760, %v190_v0  ;;  %v356_v8 = vand.u32 4294901760, %v2047_v59  ;;  %v137_v9 = vpop.permute.xlu1 %136  ;;  %v338_v13 = vand.u32 4294901760, %v337_v3 }
  0x8d   :  { %v128_v10 = vpop.permute.xlu0 %127  ;;  %v2068_v18 = vsub.f32 %v193_v63, %v2060_v4  ;;  %v139_v20 = vsel %vm21_vm0, %v1408_v1, %v137_v9  ;;  %v367_v40 = vsub.f32 %v2044_v58, %v366_v17 }
  0x8e   :  { %v2071_v19 = vsub.f32 %v190_v0, %v2062_v7  ;;  %v130_v22 = vsel %vm21_vm0, %v1406_v2, %v128_v10  ;;  %1620 = vmatmul.mubr.f32.gmra.mrb[6].mxu0 %v346_v57  ;;  %v199_v23 = vsel %vm158_vm1, %v139_v20, 0  ;;  %1533 = vmatmul.mubr.f32.gmra.mrb[4].mxu1 %v328_v11  ;;  %v357_v30 = vsub.f32 %v2047_v59, %v356_v8 }
  0x8f   :  { %v196_v27 = vsel %vm158_vm1, %v130_v22, 0  ;;  %1622 = vmatprep.mubr.f32.mxu0 %v356_v8  ;;  %v2084_v32 = vand.u32 4294901760, %v199_v23  ;;  %1535 = vmatprep.mubr.f32.mxu1 %v338_v13  ;;  %v386_v41 = vand.u32 4294901760, %v2068_v18  ;;  %v368_v63 = vand.u32 4294901760, %v367_v40 }
  0x90   :  { %v2086_v33 = vand.u32 4294901760, %v196_v27  ;;  %v376_v34 = vand.u32 4294901760, %v2071_v19  ;;  %v155_v21 = vpop.permute.xlu1 %154  ;;  %v358_v39 = vand.u32 4294901760, %v357_v30 }
  0x91   :  { %v146_v37 = vpop.permute.xlu0 %145  ;;  %v2092_v44 = vsub.f32 %v199_v23, %v2084_v32  ;;  %v157_v50 = vsel %vm21_vm0, %v1412_v28, %v155_v21  ;;  %v387_v1 = vsub.f32 %v2068_v18, %v386_v41 }
  0x92   :  { %v2095_v49 = vsub.f32 %v196_v27, %v2086_v33  ;;  %v148_v51 = vsel %vm21_vm0, %v1410_v29, %v146_v37  ;;  %1623 = vmatmul.mubr.f32.gmra.mrb[8].mxu0 %v366_v17  ;;  %v205_v52 = vsel %vm158_vm1, %v157_v50, 0  ;;  %1536 = vmatmul.mubr.f32.gmra.mrb[6].mxu1 %v348_v38  ;;  %v377_v56 = vsub.f32 %v2071_v19, %v376_v34 }
  0x93   :  { %v202_v53 = vsel %vm158_vm1, %v148_v51, 0  ;;  %1625 = vmatprep.mubr.f32.mxu0 %v376_v34  ;;  %v2102_v57 = vand.u32 4294901760, %v205_v52  ;;  %1538 = vmatprep.mubr.f32.mxu1 %v358_v39  ;;  %v406_v2 = vand.u32 4294901760, %v2092_v44  ;;  %v388_v13 = vand.u32 4294901760, %v387_v1 }
  0x94   :  { %v2104_v26 = vand.u32 4294901760, %v202_v53  ;;  %v396_v62 = vand.u32 4294901760, %v2095_v49  ;;  %v378_v0 = vand.u32 4294901760, %v377_v56 }
  0x95   :  { %v2110_v3 = vsub.f32 %v205_v52, %v2102_v57  ;;  %v407_v16 = vsub.f32 %v2092_v44, %v406_v2 }
  0x96   :  { %v2113_v8 = vsub.f32 %v202_v53, %v2104_v26  ;;  %1626 = vmatmul.mubr.f32.gmra.mrb[10].mxu0 %v386_v41  ;;  %v397_v9 = vsub.f32 %v2095_v49, %v396_v62  ;;  %1539 = vmatmul.mubr.f32.gmra.mrb[8].mxu1 %v368_v63 }
  0x97   :  { %1628 = vmatprep.mubr.f32.mxu0 %v396_v62  ;;  %1541 = vmatprep.mubr.f32.mxu1 %v378_v0  ;;  %v426_v17 = vand.u32 4294901760, %v2110_v3  ;;  %v408_v23 = vand.u32 4294901760, %v407_v16 }
  0x98   :  { %v398_v10 = vand.u32 4294901760, %v397_v9  ;;  %v416_v11 = vand.u32 4294901760, %v2113_v8 }
  0x99   :  { %v427_v27 = vsub.f32 %v2110_v3, %v426_v17 }
  0x9a   :  { %1629 = vmatmul.mubr.f32.gmra.mrb[12].mxu0 %v406_v2  ;;  %v417_v20 = vsub.f32 %v2113_v8, %v416_v11  ;;  %1542 = vmatmul.mubr.f32.gmra.mrb[10].mxu1 %v388_v13 }
  0x9b   :  { %1631 = vmatprep.mubr.f32.mxu0 %v416_v11  ;;  %1544 = vmatprep.mubr.f32.mxu1 %v398_v10  ;;  %v428_v28 = vand.u32 4294901760, %v427_v27 }
  0x9c   :  { %v418_v22 = vand.u32 4294901760, %v417_v20 }
  0x9e   :  { %1632 = vmatmul.mubr.f32.gmra.mrb[14].mxu0 %v426_v17  ;;  %1545 = vmatmul.mubr.f32.gmra.mrb[12].mxu1 %v408_v23 }
  0x9f   :  { %1638 = vmatprep.mubr.f32.mxu0 %v1943_v43  ;;  %1547 = vmatprep.mubr.f32.mxu1 %v418_v22 }
  0xa2   :  { %1639 = vmatmul.mubr.f32.vlgmr.msra.gmra.mrb[0].mxu0 %v1963_v55  ;;  %1548 = vmatmul.mubr.f32.gmra.mrb[14].mxu1 %v428_v28 }
  0xa3   :  { %1641 = vmatprep.mubr.f32.mxu0 %v1941_v42  ;;  %1554 = vmatprep.mubr.f32.mxu1 %v1943_v43 }
  0xa4   :  { %1713 = vmatpush3.bf16.msra.mxu0 %v1877_v12 }
  0xa6   :  { %1642 = vmatmul.mubr.f32.gmra.mrb[2].mxu0 %v1961_v54  ;;  %1555 = vmatmul.mubr.f32.vlgmr.msra.gmra.mrb[0].mxu1 %v1963_v55 }
  0xa7   :  { %1644 = vmatprep.mubr.f32.mxu0 %v1986_v6  ;;  %1701 = vmatpush3.bf16.msra.mxu1 %v1923_v31 }
  0xa8   :  { %1557 = vmatprep.mubr.f32.mxu1 %v1941_v42 }
  0xaa   :  { %1645 = vmatmul.mubr.f32.gmra.mrb[4].mxu0 %v1984_v5  ;;  %1558 = vmatmul.mubr.f32.gmra.mrb[2].mxu1 %v1961_v54 }
  0xab   :  { %1647 = vmatprep.mubr.f32.mxu0 %v2010_v25  ;;  %1560 = vmatprep.mubr.f32.mxu1 %v1986_v6 }
  0xae   :  { %1648 = vmatmul.mubr.f32.gmra.mrb[6].mxu0 %v2008_v24  ;;  %1561 = vmatmul.mubr.f32.gmra.mrb[4].mxu1 %v1984_v5 }
  0xaf   :  { %1650 = vmatprep.mubr.f32.mxu0 %v2036_v48  ;;  %1563 = vmatprep.mubr.f32.mxu1 %v2010_v25 }
  0xb2   :  { %1651 = vmatmul.mubr.f32.gmra.mrb[8].mxu0 %v2034_v45  ;;  %1564 = vmatmul.mubr.f32.gmra.mrb[6].mxu1 %v2008_v24 }
  0xb3   :  { %1653 = vmatprep.mubr.f32.mxu0 %v2062_v7  ;;  %1566 = vmatprep.mubr.f32.mxu1 %v2036_v48 }
  0xb6   :  { %1654 = vmatmul.mubr.f32.gmra.mrb[10].mxu0 %v2060_v4  ;;  %1567 = vmatmul.mubr.f32.gmra.mrb[8].mxu1 %v2034_v45 }
  0xb7   :  { %1656 = vmatprep.mubr.f32.mxu0 %v2086_v33  ;;  %1569 = vmatprep.mubr.f32.mxu1 %v2062_v7 }
  0xba   :  { %1657 = vmatmul.mubr.f32.gmra.mrb[12].mxu0 %v2084_v32  ;;  %1570 = vmatmul.mubr.f32.gmra.mrb[10].mxu1 %v2060_v4 }
  0xbb   :  { %1659 = vmatprep.mubr.f32.mxu0 %v2104_v26  ;;  %1572 = vmatprep.mubr.f32.mxu1 %v2086_v33 }
  0xbe   :  { %1660 = vmatmul.mubr.f32.gmra.mrb[14].mxu0 %v2102_v57  ;;  %1573 = vmatmul.mubr.f32.gmra.mrb[12].mxu1 %v2084_v32 }
  0xbf   :  { %1666 = vmatprep.mubr.f32.mxu0 %v1943_v43  ;;  %1575 = vmatprep.mubr.f32.mxu1 %v2104_v26 }
  0xc2   :  { %1667 = vmatmul.mubr.f32.vlgmr.msra.gmra.mrb[0].mxu0 %v1963_v55  ;;  %1576 = vmatmul.mubr.f32.gmra.mrb[14].mxu1 %v2102_v57 }
  0xc3   :  { %1669 = vmatprep.mubr.f32.mxu0 %v1941_v42  ;;  %1582 = vmatprep.mubr.f32.mxu1 %v1949_v47 }
  0xc6   :  { %1670 = vmatmul.mubr.f32.gmra.mrb[2].mxu0 %v1961_v54  ;;  %1583 = vmatmul.mubr.f32.vlgmr.msra.gmra.mrb[0].mxu1 %v1971_v61 }
  0xc7   :  { %1672 = vmatprep.mubr.f32.mxu0 %v1986_v6  ;;  %1585 = vmatprep.mubr.f32.mxu1 %v1946_v46 }
  0xca   :  { %1673 = vmatmul.mubr.f32.gmra.mrb[4].mxu0 %v1984_v5  ;;  %1586 = vmatmul.mubr.f32.gmra.mrb[2].mxu1 %v1968_v60 }
  0xcb   :  { %1675 = vmatprep.mubr.f32.mxu0 %v2010_v25  ;;  %1588 = vmatprep.mubr.f32.mxu1 %v1995_v15 }
  0xce   :  { %1676 = vmatmul.mubr.f32.gmra.mrb[6].mxu0 %v2008_v24  ;;  %1589 = vmatmul.mubr.f32.gmra.mrb[4].mxu1 %v1992_v14 }
  0xcf   :  { %1678 = vmatprep.mubr.f32.mxu0 %v2036_v48  ;;  %1591 = vmatprep.mubr.f32.mxu1 %v2021_v36 }
  0xd2   :  { %1679 = vmatmul.mubr.f32.gmra.mrb[8].mxu0 %v2034_v45  ;;  %1592 = vmatmul.mubr.f32.gmra.mrb[6].mxu1 %v2018_v35 }
  0xd3   :  { %1681 = vmatprep.mubr.f32.mxu0 %v2062_v7  ;;  %1594 = vmatprep.mubr.f32.mxu1 %v2047_v59 }
  0xd6   :  { %1682 = vmatmul.mubr.f32.gmra.mrb[10].mxu0 %v2060_v4  ;;  %1595 = vmatmul.mubr.f32.gmra.mrb[8].mxu1 %v2044_v58 }
  0xd7   :  { %1684 = vmatprep.mubr.f32.mxu0 %v2086_v33  ;;  %1597 = vmatprep.mubr.f32.mxu1 %v2071_v19 }
  0xda   :  { %1685 = vmatmul.mubr.f32.gmra.mrb[12].mxu0 %v2084_v32  ;;  %1598 = vmatmul.mubr.f32.gmra.mrb[10].mxu1 %v2068_v18 }
  0xdb   :  { %1687 = vmatprep.mubr.f32.mxu0 %v2104_v26  ;;  %1600 = vmatprep.mubr.f32.mxu1 %v2095_v49 }
  0xde   :  { %1688 = vmatmul.mubr.f32.gmra.mrb[14].mxu0 %v2102_v57  ;;  %1601 = vmatmul.mubr.f32.gmra.mrb[12].mxu1 %v2092_v44 }
  0xdf   :  { %1603 = vmatprep.mubr.f32.mxu1 %v2113_v8 }
  0xe2   :  { %1604 = vmatmul.mubr.f32.gmra.mrb[14].mxu1 %v2110_v3 }
 0x195   :  { %v1668_v12 = vpop.f32.mrb[0].mxu0 }
 0x196   :  { %v1217_v31 = vpop.f32.mrb[1].mxu0 }
 0x199   :  { %v1671_v42 = vpop.f32.mrb[2].mxu0  ;;  %v1584_v43 = vpop.f32.mrb[0].mxu1 }
 0x19a   :  { %v1229_v46 = vpop.f32.mrb[3].mxu0  ;;  %v1714_v47 = vadd.f32 %v1668_v12, %v1584_v43  ;;  %v677_v54 = vpop.f32.mrb[1].mxu1 }
 0x19b   :  { %v1715_v55 = vadd.f32 %v1217_v31, %v677_v54 }
 0x19c   :  { %1313 = vrot.lane.b32.xlu0 %v1714_v47, %s1823_s0 }
 0x19d   :  { %v1674_v60 = vpop.f32.mrb[4].mxu0  ;;  %1311 = vst.msk [vmem:[#allocation2] sm:$0xff] %vm158_vm1, %v1715_v55  ;;  %v1587_v61 = vpop.f32.mrb[2].mxu1 }
 0x19e   :  { %v1241_v5 = vpop.f32.mrb[5].mxu0  ;;  %v1716_v6 = vadd.f32 %v1671_v42, %v1587_v61  ;;  %v691_v14 = vpop.f32.mrb[3].mxu1 }
 0x19f   :  { %v1717_v15 = vadd.f32 %v1229_v46, %v691_v14 }
 0x1a0   :  { %1321 = vrot.lane.b32.xlu1 %v1716_v6, %s1823_s0 }
 0x1a1   :  { %v1677_v24 = vpop.f32.mrb[6].mxu0  ;;  %1319 = vst.msk [vmem:[#allocation2 + $0x8] sm:$0xff] %vm158_vm1, %v1717_v15  ;;  %v1590_v25 = vpop.f32.mrb[4].mxu1 }
 0x1a2   :  { %v1253_v35 = vpop.f32.mrb[7].mxu0  ;;  %v1718_v36 = vadd.f32 %v1674_v60, %v1590_v25  ;;  %v705_v45 = vpop.f32.mrb[5].mxu1 }
 0x1a3   :  { %v1719_v48 = vadd.f32 %v1241_v5, %v705_v45 }
 0x1a4   :  { %1328 = vrot.lane.b32.xlu0 %v1718_v36, %s1823_s0 }
 0x1a5   :  { %v1680_v58 = vpop.f32.mrb[8].mxu0  ;;  %1326 = vst.msk [vmem:[#allocation2 + $0x10] sm:$0xff] %vm158_vm1, %v1719_v48  ;;  %v1593_v59 = vpop.f32.mrb[6].mxu1 }
 0x1a6   :  { %v1265_v4 = vpop.f32.mrb[9].mxu0  ;;  %v1720_v7 = vadd.f32 %v1677_v24, %v1593_v59  ;;  %v719_v18 = vpop.f32.mrb[7].mxu1 }
 0x1a7   :  { %v1721_v19 = vadd.f32 %v1253_v35, %v719_v18 }
 0x1a8   :  { %1335 = vrot.lane.b32.xlu1 %v1720_v7, %s1823_s0 }
 0x1a9   :  { %v1683_v29 = vpop.f32.mrb[10].mxu0  ;;  %1333 = vst.msk [vmem:[#allocation2 + $0x18] sm:$0xff] %vm158_vm1, %v1721_v19  ;;  %v1596_v30 = vpop.f32.mrb[8].mxu1 }
 0x1aa   :  { %v1277_v32 = vpop.f32.mrb[11].mxu0  ;;  %v1722_v33 = vadd.f32 %v1680_v58, %v1596_v30  ;;  %v733_v34 = vpop.f32.mrb[9].mxu1 }
 0x1ab   :  { %v1723_v21 = vadd.f32 %v1265_v4, %v733_v34 }
 0x1ac   :  { %1342 = vrot.lane.b32.xlu0 %v1722_v33, %s1823_s0 }
 0x1ad   :  { %v1686_v37 = vpop.f32.mrb[12].mxu0  ;;  %1340 = vst.msk [vmem:[#allocation2 + $0x20] sm:$0xff] %vm158_vm1, %v1723_v21  ;;  %v1599_v38 = vpop.f32.mrb[10].mxu1 }
 0x1ae   :  { %v1289_v39 = vpop.f32.mrb[13].mxu0  ;;  %v1724_v40 = vadd.f32 %v1683_v29, %v1599_v38  ;;  %v747_v41 = vpop.f32.mrb[11].mxu1 }
 0x1af   :  { %v1725_v44 = vadd.f32 %v1277_v32, %v747_v41 }
 0x1b0   :  { %1349 = vrot.lane.b32.xlu1 %v1724_v40, %s1823_s0 }
 0x1b1   :  { %v1689_v49 = vpop.f32.mrb[14].mxu0  ;;  %1347 = vst.msk [vmem:[#allocation2 + $0x28] sm:$0xff] %vm158_vm1, %v1725_v44  ;;  %v1602_v50 = vpop.f32.mrb[12].mxu1 }
 0x1b2   :  { %v1301_v51 = vpop.f32.mrb[15].mxu0  ;;  %v1726_v52 = vadd.f32 %v1686_v37, %v1602_v50  ;;  %v761_v53 = vpop.f32.mrb[13].mxu1 }
 0x1b3   :  { %v1727_v56 = vadd.f32 %v1289_v39, %v761_v53 }
 0x1b4   :  { %1356 = vrot.lane.b32.xlu0 %v1726_v52, %s1823_s0 }
 0x1b5   :  { %1354 = vst.msk [vmem:[#allocation2 + $0x30] sm:$0xff] %vm158_vm1, %v1727_v56  ;;  %v1605_v57 = vpop.f32.mrb[14].mxu1 }
 0x1b6   :  { %v1728_v26 = vadd.f32 %v1689_v49, %v1605_v57  ;;  %v775_v62 = vpop.f32.mrb[15].mxu1 }
 0x1b7   :  { %v1729_v63 = vadd.f32 %v1301_v51, %v775_v62 }
 0x1b8   :  { %1363 = vrot.lane.b32.xlu1 %v1728_v26, %s1823_s0 }
 0x1b9   :  { %1361 = vst.msk [vmem:[#allocation2 + $0x38] sm:$0xff] %vm158_vm1, %v1729_v63 }
 0x20e   :  { %v1314_v0 = vpop.permute.xlu0 %1313 }
 0x20f   :  { %1317 = vst.msk [vmem:[#allocation2] sm:$0xff] %vm1316_vm2, %v1314_v0 }
 0x212   :  { %v1322_v1 = vpop.permute.xlu1 %1321 }
 0x213   :  { %1324 = vst.msk [vmem:[#allocation2 + $0x8] sm:$0xff] %vm1316_vm2, %v1322_v1 }
 0x216   :  { %v1329_v2 = vpop.permute.xlu0 %1328 }
 0x217   :  { %1331 = vst.msk [vmem:[#allocation2 + $0x10] sm:$0xff] %vm1316_vm2, %v1329_v2 }
 0x21a   :  { %v1336_v3 = vpop.permute.xlu1 %1335 }
 0x21b   :  { %1338 = vst.msk [vmem:[#allocation2 + $0x18] sm:$0xff] %vm1316_vm2, %v1336_v3 }
 0x21e   :  { %v1343_v8 = vpop.permute.xlu0 %1342 }
 0x21f   :  { %1345 = vst.msk [vmem:[#allocation2 + $0x20] sm:$0xff] %vm1316_vm2, %v1343_v8 }
 0x222   :  { %v1350_v9 = vpop.permute.xlu1 %1349 }
 0x223   :  { %1352 = vst.msk [vmem:[#allocation2 + $0x28] sm:$0xff] %vm1316_vm2, %v1350_v9 }
 0x226   :  { %v1357_v10 = vpop.permute.xlu0 %1356 }
 0x227   :  { %1359 = vst.msk [vmem:[#allocation2 + $0x30] sm:$0xff] %vm1316_vm2, %v1357_v10 }
 0x22a   :  { %v1364_v11 = vpop.permute.xlu1 %1363 }
 0x22b   :  { %1366 = vst.msk [vmem:[#allocation2 + $0x38] sm:$0xff] %vm1316_vm2, %v1364_v11 }
 0x22c   :  { %1809 = shalt.err (!%p1806_p4)
}
 0x22d   :  { %s1810_s27 = scalar_lea.hbm %s2226_s2, 1024 }
 0x22e   :  { %p1811_p5 = scmp.ne.s32.totalorder %s2226_s2, %s1810_s27  ;;  %p1814_p6 = scmp.lt.u32.totalorder %s1810_s27, %s2226_s2 }
 0x230   :  { %p1816_p7 = pnand %p1814_p6, %p1811_p5 }
 0x232   :  { %1819 = shalt.err (!%p1816_p7)
}
 0x233   :  { %s1825_s3 = smov 128  }
 0x234   :  { %1378 = dma.vmem_to_hbm [thread:$0]  %s1373_s23, 1024, %s2226_s2, [#allocation3], %s1825_s3, %s1825_s3, %s1822_s13  }
 0x235   :  { %1820 = dma.done.wait [#allocation3], 1024  }
 0x236   :  { %1821 = vsyncadd [#allocation3], 4294966272 }
 0x237   :  { %1382 = vsyncpa [#allocation3], 1 }

</bundles_post_ra>
